<compile_context>
chip_gen: v7x
topology: tpu7x:2x2x1
jax: 0.10.0
libtpu: 0.0.40
codegen_flags: <defaults>
</compile_context>

<pallas_src>
import jax
import jax.numpy as jnp
from jax.experimental import pallas as pl
from jax.experimental.pallas import tpu as pltpu

NEG_SLOPE = 0.01  # torch.nn.LeakyReLU default


def _leaky_relu(x):
    return jnp.where(x >= 0, x, NEG_SLOPE * x)


def conv1x1_mlp_kernel(x_ref, w1_ref, b1_ref, w2_ref, b2_ref, w3_ref, b3_ref,
                       o_ref):
    # x_ref: (c_in, tm) — pixels on the lane axis.
    x = x_ref[...]

    h = jnp.dot(w1_ref[...], x, preferred_element_type=jnp.float32)
    h = _leaky_relu(h + b1_ref[...])          # (hid, tm) + (hid, 1)

    h = jnp.dot(w2_ref[...], h, preferred_element_type=jnp.float32)
    h = _leaky_relu(h + b2_ref[...])

    o = jnp.dot(w3_ref[...], h, preferred_element_type=jnp.float32)
    o = o + b3_ref[...]                       # (c_out, tm) + (c_out, 1)

    o_ref[...] = o.astype(o_ref.dtype)


def conv2d1x1_forward(x_nchw, params, *, tm=1024):
    """x_nchw: (N, C_in, H, W) float32. params: w1,b1,w2,b2,w3,b3.

    Matches nn.Conv2d(in,hid,1,1) -> LeakyReLU -> Conv2d(hid,hid,1,1) ->
    LeakyReLU -> Conv2d(hid,out,1,1). Weights are (out_c, in_c), biases
    (out_c, 1). Returns (N, C_out, H, W).
    """
    w1, b1 = params["w1"], params["b1"]   # (hid,   c_in ), (hid,   1)
    w2, b2 = params["w2"], params["b2"]   # (hid,   hid  ), (hid,   1)
    w3, b3 = params["w3"], params["b3"]   # (c_out, hid  ), (c_out, 1)

    n, c_in, h, w = x_nchw.shape
    hid = w1.shape[0]
    c_out = w3.shape[0]
    hw = h * w

    # NCHW is already channel-major over pixels: this reshape is free.
    x3d = x_nchw.reshape(n, c_in, hw)

    # Pixel tile: multiple of 128 lanes, as large as possible up to `tm`.
    tm = min(tm, pl.cdiv(hw, 128) * 128)
    tm = max(128, (tm // 128) * 128)
    m_pad = pl.cdiv(hw, tm) * tm
    if m_pad != hw:
        # Ragged tail: pad the pixel axis (rare; demo shapes divide evenly).
        # TODO(synk): replace with an in-kernel masked tail to avoid the copy.
        x3d = jnp.pad(x3d, ((0, 0), (0, 0), (0, m_pad - hw)))

    grid = (n, m_pad // tm)

    out3d = pl.pallas_call(
        conv1x1_mlp_kernel,
        out_shape=jax.ShapeDtypeStruct((n, c_out, m_pad), x_nchw.dtype),
        grid_spec=pltpu.PrefetchScalarGridSpec(
            num_scalar_prefetch=0,
            grid=grid,
            in_specs=[
                # x tile: batch squeezed, channels on sublanes, pixels on lanes
                pl.BlockSpec((None, c_in, tm), lambda b, i: (b, 0, i)),
                pl.BlockSpec((hid, c_in), lambda b, i: (0, 0)),    # w1 (full)
                pl.BlockSpec((hid, 1), lambda b, i: (0, 0)),       # b1
                pl.BlockSpec((hid, hid), lambda b, i: (0, 0)),     # w2
                pl.BlockSpec((hid, 1), lambda b, i: (0, 0)),       # b2
                pl.BlockSpec((c_out, hid), lambda b, i: (0, 0)),   # w3
                pl.BlockSpec((c_out, 1), lambda b, i: (0, 0)),     # b3
            ],
            out_specs=pl.BlockSpec((None, c_out, tm), lambda b, i: (b, 0, i)),
        ),
        # Tiles are tiny (w2 is 4 KiB, x/out tiles tens of KiB even at tm=2048)
        # so the default scoped-VMEM limit is ample on v5e/v6e/v7x.
        compiler_params=pltpu.CompilerParams(
            dimension_semantics=("parallel", "parallel")),
    )(x3d, w1, b1, w2, b2, w3, b3)

    if m_pad != hw:
        out3d = out3d[:, :, :hw]
    return out3d.reshape(n, c_out, h, w)


def init_params(key, in_f, hidden_dim, out_f, dtype=jnp.float32):
    """Deterministic synthetic init matching nn.Conv2d 1x1 shapes.

    PyTorch Conv2d weight is (out_c, in_c, 1, 1); we store (out_c, in_c)
    plus bias (out_c, 1) so the kernel's W @ x orientation is native."""
    ks = jax.random.split(key, 6)

    def uinit(k, fan_in, shape):
        bound = 1.0 / jnp.sqrt(fan_in)
        return jax.random.uniform(k, shape, dtype, minval=-bound, maxval=bound)

    return {
        "w1": uinit(ks[0], in_f, (hidden_dim, in_f)),
        "b1": uinit(ks[1], in_f, (hidden_dim, 1)),
        "w2": uinit(ks[2], hidden_dim, (hidden_dim, hidden_dim)),
        "b2": uinit(ks[3], hidden_dim, (hidden_dim, 1)),
        "w3": uinit(ks[4], hidden_dim, (out_f, hidden_dim)),
        "b3": uinit(ks[5], hidden_dim, (out_f, 1)),
    }


def reference_forward(x_nchw, params):
    """Pure-JAX reference (1x1 convs == channel matmuls, NCHW-native)."""
    n, c, h, w = x_nchw.shape
    x = x_nchw.reshape(n, c, h * w)                       # (N, C, HW)

    def layer(x, wt, b):                                  # wt (o,i), b (o,1)
        return jnp.einsum("oi,nim->nom", wt, x) + b[None]

    y = _leaky_relu(layer(x, params["w1"], params["b1"]))
    y = _leaky_relu(layer(y, params["w2"], params["b2"]))
    y = layer(y, params["w3"], params["b3"])
    return y.reshape(n, -1, h, w)


if __name__ == "__main__":
    key = jax.random.PRNGKey(0)
    k_x, k_p = jax.random.split(key)

    # Small shapes consistent with Conv2d1x1(in_f=4, hidden_dim=32, out_f=8)
    N, C_IN, H, W = 2, 4, 16, 16
    HIDDEN, C_OUT = 32, 8

    x = jax.random.normal(k_x, (N, C_IN, H, W), dtype=jnp.float32)
    params = init_params(k_p, C_IN, HIDDEN, C_OUT)

    out = conv2d1x1_forward(x, params)
    out = jax.block_until_ready(out)

    ref = reference_forward(x, params)
    assert out.shape == (N, C_OUT, H, W)
    assert jnp.allclose(out, ref, atol=1e-5, rtol=1e-5)

    print("KERNEL_OK")
</pallas_src>

<mosaic_0001>
module attributes {stable_mosaic.version = 11 : i64} {
  func.func @conv1x1_mlp_kernel(%arg0: i32, %arg1: i32, %arg2: memref<1x4x256xf32, #tpu.memory_space<vmem>>, %arg3: memref<32x4xf32, #tpu.memory_space<vmem>>, %arg4: memref<32x1xf32, #tpu.memory_space<vmem>>, %arg5: memref<32x32xf32, #tpu.memory_space<vmem>>, %arg6: memref<32x1xf32, #tpu.memory_space<vmem>>, %arg7: memref<8x32xf32, #tpu.memory_space<vmem>>, %arg8: memref<8x1xf32, #tpu.memory_space<vmem>>, %arg9: memref<1x8x256xf32, #tpu.memory_space<vmem>>) attributes {dimension_semantics = [#tpu.dimension_semantics<parallel>, #tpu.dimension_semantics<parallel>], iteration_bounds = array<i64: 2, 1>, scalar_prefetch = 0 : i64, scratch_operands = 0 : i64, tpu.core_type = #tpu.core_type<tc>, window_params = [{transform_indices = @transform_0, window_bounds = array<i64: 1, 4, 256>}, {pipeline_mode = #tpu.pipeline_mode<synchronous>, transform_indices = @transform_1, window_bounds = array<i64: 32, 4>}, {pipeline_mode = #tpu.pipeline_mode<synchronous>, transform_indices = @transform_2, window_bounds = array<i64: 32, 1>}, {pipeline_mode = #tpu.pipeline_mode<synchronous>, transform_indices = @transform_3, window_bounds = array<i64: 32, 32>}, {pipeline_mode = #tpu.pipeline_mode<synchronous>, transform_indices = @transform_4, window_bounds = array<i64: 32, 1>}, {pipeline_mode = #tpu.pipeline_mode<synchronous>, transform_indices = @transform_5, window_bounds = array<i64: 8, 32>}, {pipeline_mode = #tpu.pipeline_mode<synchronous>, transform_indices = @transform_6, window_bounds = array<i64: 8, 1>}, {transform_indices = @transform_7, window_bounds = array<i64: 1, 8, 256>}]} {
    %c0 = arith.constant 0 : index
    %c0_0 = arith.constant 0 : index
    %c0_1 = arith.constant 0 : index
    %0 = vector.load %arg2[%c0, %c0_0, %c0_1] : memref<1x4x256xf32, #tpu.memory_space<vmem>>, vector<1x4x256xf32>
    %1 = vector.shape_cast %0 : vector<1x4x256xf32> to vector<4x256xf32>
    %c0_2 = arith.constant 0 : index
    %c0_3 = arith.constant 0 : index
    %2 = vector.load %arg3[%c0_2, %c0_3] : memref<32x4xf32, #tpu.memory_space<vmem>>, vector<32x4xf32>
    %cst = arith.constant dense<0.000000e+00> : vector<32x256xf32>
    %3 = tpu.matmul %2, %1, %cst {dimension_numbers = #tpu.dot_dimension_numbers<[1], [0], [0], [1], [0, 0, 1, 1], [], []>} : vector<32x4xf32>, vector<4x256xf32>, vector<32x256xf32> -> vector<32x256xf32>
    %c0_4 = arith.constant 0 : index
    %c0_5 = arith.constant 0 : index
    %4 = vector.load %arg4[%c0_4, %c0_5] : memref<32x1xf32, #tpu.memory_space<vmem>>, vector<32x1xf32>
    %5 = vector.broadcast %4 : vector<32x1xf32> to vector<32x256xf32>
    %6 = arith.addf %3, %5 : vector<32x256xf32>
    %cst_6 = arith.constant 0.000000e+00 : f32
    %7 = vector.broadcast %cst_6 : f32 to vector<32x256xf32>
    %8 = arith.cmpf oge, %6, %7 : vector<32x256xf32>
    %cst_7 = arith.constant 0.00999999977 : f32
    %9 = vector.broadcast %cst_7 : f32 to vector<32x256xf32>
    %10 = arith.mulf %9, %6 : vector<32x256xf32>
    %11 = arith.select %8, %6, %10 : vector<32x256xi1>, vector<32x256xf32>
    %c0_8 = arith.constant 0 : index
    %c0_9 = arith.constant 0 : index
    %12 = vector.load %arg5[%c0_8, %c0_9] : memref<32x32xf32, #tpu.memory_space<vmem>>, vector<32x32xf32>
    %cst_10 = arith.constant dense<0.000000e+00> : vector<32x256xf32>
    %13 = tpu.matmul %12, %11, %cst_10 {dimension_numbers = #tpu.dot_dimension_numbers<[1], [0], [0], [1], [0, 0, 1, 1], [], []>} : vector<32x32xf32>, vector<32x256xf32>, vector<32x256xf32> -> vector<32x256xf32>
    %c0_11 = arith.constant 0 : index
    %c0_12 = arith.constant 0 : index
    %14 = vector.load %arg6[%c0_11, %c0_12] : memref<32x1xf32, #tpu.memory_space<vmem>>, vector<32x1xf32>
    %15 = vector.broadcast %14 : vector<32x1xf32> to vector<32x256xf32>
    %16 = arith.addf %13, %15 : vector<32x256xf32>
    %cst_13 = arith.constant 0.000000e+00 : f32
    %17 = vector.broadcast %cst_13 : f32 to vector<32x256xf32>
    %18 = arith.cmpf oge, %16, %17 : vector<32x256xf32>
    %cst_14 = arith.constant 0.00999999977 : f32
    %19 = vector.broadcast %cst_14 : f32 to vector<32x256xf32>
    %20 = arith.mulf %19, %16 : vector<32x256xf32>
    %21 = arith.select %18, %16, %20 : vector<32x256xi1>, vector<32x256xf32>
    %c0_15 = arith.constant 0 : index
    %c0_16 = arith.constant 0 : index
    %22 = vector.load %arg7[%c0_15, %c0_16] : memref<8x32xf32, #tpu.memory_space<vmem>>, vector<8x32xf32>
    %cst_17 = arith.constant dense<0.000000e+00> : vector<8x256xf32>
    %23 = tpu.matmul %22, %21, %cst_17 {dimension_numbers = #tpu.dot_dimension_numbers<[1], [0], [0], [1], [0, 0, 1, 1], [], []>} : vector<8x32xf32>, vector<32x256xf32>, vector<8x256xf32> -> vector<8x256xf32>
    %c0_18 = arith.constant 0 : index
    %c0_19 = arith.constant 0 : index
    %24 = vector.load %arg8[%c0_18, %c0_19] : memref<8x1xf32, #tpu.memory_space<vmem>>, vector<8x1xf32>
    %25 = vector.broadcast %24 : vector<8x1xf32> to vector<8x256xf32>
    %26 = arith.addf %23, %25 : vector<8x256xf32>
    %c0_20 = arith.constant 0 : index
    %c0_21 = arith.constant 0 : index
    %c0_22 = arith.constant 0 : index
    %27 = vector.load %arg9[%c0_20, %c0_21, %c0_22] : memref<1x8x256xf32, #tpu.memory_space<vmem>>, vector<1x8x256xf32>
    %28 = vector.shape_cast %27 : vector<1x8x256xf32> to vector<8x256xf32>
    %29 = vector.shape_cast %26 : vector<8x256xf32> to vector<1x8x256xf32>
    tpu.vector_store %arg9[%c0_20, %c0_21, %c0_22], %29 {strides = array<i32>} : memref<1x8x256xf32, #tpu.memory_space<vmem>>, vector<1x8x256xf32>,
    return
  }
  func.func @transform_0(%arg0: i32, %arg1: i32) -> (i32, i32, i32) {
    %c0_i32 = arith.constant 0 : i32
    %c0_i32_0 = arith.constant 0 : i32
    return %arg0, %c0_i32, %arg1 : i32, i32, i32
  }
  func.func @transform_1(%arg0: i32, %arg1: i32) -> (i32, i32) {
    %c0_i32 = arith.constant 0 : i32
    %c0_i32_0 = arith.constant 0 : i32
    %c0_i32_1 = arith.constant 0 : i32
    return %c0_i32, %c0_i32_0 : i32, i32
  }
  func.func @transform_2(%arg0: i32, %arg1: i32) -> (i32, i32) {
    %c0_i32 = arith.constant 0 : i32
    %c0_i32_0 = arith.constant 0 : i32
    %c0_i32_1 = arith.constant 0 : i32
    return %c0_i32, %c0_i32_0 : i32, i32
  }
  func.func @transform_3(%arg0: i32, %arg1: i32) -> (i32, i32) {
    %c0_i32 = arith.constant 0 : i32
    %c0_i32_0 = arith.constant 0 : i32
    %c0_i32_1 = arith.constant 0 : i32
    return %c0_i32, %c0_i32_0 : i32, i32
  }
  func.func @transform_4(%arg0: i32, %arg1: i32) -> (i32, i32) {
    %c0_i32 = arith.constant 0 : i32
    %c0_i32_0 = arith.constant 0 : i32
    %c0_i32_1 = arith.constant 0 : i32
    return %c0_i32, %c0_i32_0 : i32, i32
  }
  func.func @transform_5(%arg0: i32, %arg1: i32) -> (i32, i32) {
    %c0_i32 = arith.constant 0 : i32
    %c0_i32_0 = arith.constant 0 : i32
    %c0_i32_1 = arith.constant 0 : i32
    return %c0_i32, %c0_i32_0 : i32, i32
  }
  func.func @transform_6(%arg0: i32, %arg1: i32) -> (i32, i32) {
    %c0_i32 = arith.constant 0 : i32
    %c0_i32_0 = arith.constant 0 : i32
    %c0_i32_1 = arith.constant 0 : i32
    return %c0_i32, %c0_i32_0 : i32, i32
  }
  func.func @transform_7(%arg0: i32, %arg1: i32) -> (i32, i32, i32) {
    %c0_i32 = arith.constant 0 : i32
    %c0_i32_0 = arith.constant 0 : i32
    return %arg0, %c0_i32, %arg1 : i32, i32, i32
  }
}

</mosaic_0001>

<bundles_post_ra>
// kernel: tpu_custom_call.1
= control target key start
LH: loop header
LB: loop body
LE: loop exit
PB: predicated region body
PF: predicated region fallthrough
CT: control target
= control target key end

     0   :  { %12 = vsyncpa [#allocation3], 0  ;;  %s1209_s0 = inlined_call_operand.vmem [shape: f32[2,4,256], index: 0, kind: input, shape index: {}]   ;;  %s1210_s1 = inlined_call_operand.vmem [shape: f32[32,4], index: 1, kind: input, shape index: {}]   ;;  %s1211_s2 = inlined_call_operand.vmem [shape: f32[32,1], index: 2, kind: input, shape index: {}]   ;;  %s1212_s3 = inlined_call_operand.vmem [shape: f32[32,32], index: 3, kind: input, shape index: {}]   ;;  %s1213_s4 = inlined_call_operand.vmem [shape: f32[32,1], index: 4, kind: input, shape index: {}]   ;;  %s1214_s5 = inlined_call_operand.vmem [shape: f32[8,32], index: 5, kind: input, shape index: {}]   ;;  %s1215_s6 = inlined_call_operand.vmem [shape: f32[8,1], index: 6, kind: input, shape index: {}]   ;;  %s1216_s7 = inlined_call_operand.hbm [shape: f32[2,8,256], index: 7, kind: output, shape index: {}]  }
   0x1   :  { %14 = vsyncpa [#allocation3 + $0x1], 0  ;;  %s1025_s24 = smov 0   ;;  %s1027_s25 = smov 0  }
   0x2   :  { %s1029_s26 = smov 0   ;;  %s1031_s27 = smov 0  }
   0x3   :  { %s1033_s28 = smov 0   ;;  %s1035_s29 = smov 0  }
   0x4 LB: > { %s800_s30 = sadd.s32 4294967295, %s980_s29   ;;  %s801_s8 = sadd.s32 4294967294, %s980_s29   ;;  %s980_s29 = sphi %s1035_s29, %s20_s29   ;;  %s976_s28 = sphi %s1033_s28, %s1223_s28   ;;  %s972_s27 = sphi %s1031_s27, %s1222_s27   ;;  %s968_s26 = sphi %s1029_s26, %s1221_s26   ;;  %s964_s25 = sphi %s1027_s25, %s1220_s25   ;;  %s960_s24 = sphi %s1025_s24, %s1219_s24  }
   0x5   : > { %s32_s9 = sadd.s32 1, %s976_s28  ;;  %s195_s10 = sadd.s32 1, %s968_s26 }
   0x6   : > { %p34_p0 = scmp.ge.s32.totalorder %s32_s9, 2  ;;  %p205_p1 = scmp.ne.s32.totalorder %s968_s26, %s964_s25 }
   0x7   : > { %p206_p2 = scmp.eq.s32.totalorder %s800_s30, 1  ;;  %p211_p3 = scmp.ne.s32.totalorder %s964_s25, %s960_s24 }
   0x8   : > { %s1225_s9 = smov (%p34_p0, %s32_s9), 0  ;;  %p212_p5 = scmp.eq.s32.totalorder %s801_s8, 1 }
   0x9   : > { %p1065_p4 = por %p206_p2, %p205_p1  ;;  %s190_s12 = ssub.s32 %s976_s28, %s1225_s9 }
   0xa   : > { %p804_p6 = scmp.ge.s32.totalorder %s980_s29, 1  ;;  %p193_p7 = scmp.eq.s32.totalorder %s190_s12, 0 }
   0xb   : > { %p1072_p8 = por %p212_p5, %p211_p3  ;;  %p261_p9 = scmp.lt.s32.totalorder %s980_s29, 3 }
   0xc   : > { %s1078_s14 = scalar_select %p193_p7, %s968_s26, %s195_s10  }
   0xd   : > { %p262_p10 = pnand %p804_p6, %p261_p9 }
   0xe   : > { %p298_p11 = scmp.lt.s32.totalorder (!%p262_p10), %s972_s27, 1  ;;  %v982_v0 = vmov (!%p262_p10), 0.0   ;;  %v313_v1 = vld [vmem:[%s1211_s2] sm:$0xff] (!%p262_p10)  ;;  %v983_v2 = vmov (!%p262_p10), 0   ;;  %v315_v3 = vld [vmem:[%s1211_s2 + $0x10] sm:$0xff] (!%p262_p10)  ;;  %v314_v4 = vld [vmem:[%s1211_s2 + $0x8] sm:$0xff] (!%p262_p10) }
   0xf   : > { %265 = sbr.rel (%p262_p10) target bundleno = 732 (0x2dc), region = 48  ;;  %421 = vmatprep.mubr.f32.mxu0 (!%p262_p10), %v982_v0  ;;  %575 = vmatprep.mubr.f32.mxu1 (!%p262_p10), %v982_v0  ;;  %v316_v5 = vld [vmem:[%s1211_s2 + $0x18] sm:$0xff] (!%p262_p10)  ;;  %vm352_vm0 = vcmask (!%p262_p10), 1043456   ;;  %v309_v8 = vld [vmem:[%s1210_s1] sm:$0xff] (!%p262_p10)  ;;  %vm339_vm1 = vcmask (!%p262_p10), 31744   ;;  %v475_v10 = vld [vmem:[%s1213_s4 + $0x8] sm:$0xff] (!%p262_p10) }
  0x10   : > { %899 = vset.pattern.permute.xlu0 (!%p262_p10), %v983_v2  ;;  %900 = vset.pattern.permute.xlu1 (!%p262_p10), %v983_v2  ;;  %v474_v9 = vld [vmem:[%s1213_s4] sm:$0xff] (!%p262_p10)  ;;  %v310_v11 = vld [vmem:[%s1210_s1 + $0x8] sm:$0xff] (!%p262_p10)  ;;  %v476_v12 = vld [vmem:[%s1213_s4 + $0x10] sm:$0xff] (!%p262_p10)  ;;  %vm498_vm10 = vcmask (!%p262_p10), 261120   ;;  %s825_s19 = sshll.u32 (!%p262_p10), %s972_s27, 8  ;;  %s984_s10 = smov (!%p262_p10), [#allocation2]  }
  0x11   : > { %319 = vperm.xlu0 (!%p262_p10), %899, %v313_v1   ;;  %329 = vperm.xlu1 (!%p262_p10), %900, %v315_v3   ;;  %v477_v13 = vld [vmem:[%s1213_s4 + $0x18] sm:$0xff] (!%p262_p10)  ;;  %v311_v14 = vld [vmem:[%s1210_s1 + $0x10] sm:$0xff] (!%p262_p10)  ;;  %v625_v15 = vld [vmem:[%s1215_s6] sm:$0xff] (!%p262_p10)  ;;  %s1162_s30 = scalar_lea.hbm (!%p262_p10), %s1216_s7, %s825_s19 }
  0x12   : > { %v312_v16 = vld [vmem:[%s1210_s1 + $0x18] sm:$0xff] (!%p262_p10)  ;;  %v470_v57 = vld [vmem:[%s1212_s3] sm:$0xff] (!%p262_p10)  ;;  %v471_v58 = vld [vmem:[%s1212_s3 + $0x8] sm:$0xff] (!%p262_p10) }
  0x13   : > { %v472_v59 = vld [vmem:[%s1212_s3 + $0x10] sm:$0xff] (!%p262_p10)  ;;  %v473_v60 = vld [vmem:[%s1212_s3 + $0x18] sm:$0xff] (!%p262_p10) }
  0x15   : > { %324 = vperm.xlu0 (!%p262_p10), %899, %v314_v4   ;;  %334 = vperm.xlu1 (!%p262_p10), %900, %v316_v5  }
  0x16   : > { %s299_s17 = scalar_select %p298_p11, %s972_s27, 1 }
  0x18   : > { %s824_s20 = sshll.u32 %s299_s17, 3  ;;  %s294_s17 = sand.u32 1, %s964_s25  }
  0x19   : > { %s305_s12 = scalar_lea.vmem %s1209_s0, %s824_s20  ;;  %480 = vperm.xlu0 %899, %v474_v9   ;;  %485 = vperm.xlu1 %900, %v475_v10   ;;  %s805_s18 = sshll.u32 %s294_s17, 4 }
  0x1a   : > { %v308_v6 = vld [vmem:[%s305_s12] sm:$0xff]  ;;  %s296_s21 = scalar_lea.vmem [#allocation2], %s805_s18  ;;  %s708_s27 = scalar_lea.sflag [#allocation3], %s294_s17 }
  0x1b   : > { %v338_v7 = vcombine.high %v308_v6, %v308_v6  ;;  %s724_s20 = sshll.u32 %s296_s21, 4  ;;  %s906_s12 = sshll.u32 %s984_s10, 4  ;;  %s1164_s20 = int_to_ptr.vmem [resolvable:$true] %s724_s20  ;;  %s907_s12 = int_to_ptr.vmem [resolvable:$false] %s906_s12 }
  0x1c   : > { %s902_s8 = scalar_lea.vmem %s1164_s20, 256  ;;  %s908_s15 = scalar_lea.vmem %s907_s12, 512 }
  0x1d   : > { %808 = vmatprep.subr.msk.mxu0 %vm352_vm0, %v338_v7  ;;  %490 = vperm.xlu0 %899, %v476_v12   ;;  %p903_p12 = scmp.ne.s32.totalorder %s1164_s20, %s902_s8  ;;  %p909_p1 = scmp.lt.s32.totalorder %s1164_s20, %s907_s12 }
  0x1e   : > { %809 = vmatpush1.msk.msra.mxu0 %vm352_vm0, %v308_v6  ;;  %495 = vperm.xlu1 %900, %v477_v13   ;;  %p910_p2 = scmp.lt.s32.totalorder %s908_s15, %s902_s8 }
  0x1f   : > { %810 = vmatmul.mubr.msk.f32.vlgmr.msra.gmra.mrb[0].mxu0 %vm339_vm1, %v309_v8  ;;  %p904_p13 = pnand %p903_p12, %p1065_p4 }
  0x20   : > { %427 = vmatprep.mubr.f32.mxu0 %v982_v0  ;;  %p911_p3 = por %p910_p2, %p909_p1 }
  0x21   : > { %628 = vperm.xlu0 %899, %v625_v15   ;;  %p905_p0 = pneg %p904_p13 }
  0x23   : > { %811 = vmatmul.mubr.msk.f32.gmra.mrb[2].mxu0 %vm339_vm1, %v310_v11  ;;  %p912_p5 = pnand %p911_p3, %p905_p0 }
  0x24   : > { %433 = vmatprep.mubr.f32.mxu0 %v982_v0 }
  0x27   : > { %812 = vmatmul.mubr.msk.f32.gmra.mrb[4].mxu0 %vm339_vm1, %v311_v14 }
  0x28   : > { %439 = vmatprep.mubr.f32.mxu0 %v982_v0 }
  0x2b   : > { %813 = vmatmul.mubr.msk.f32.gmra.mrb[6].mxu0 %vm339_vm1, %v312_v16 }
  0x2c   : > { %698 = vmatprep.mubr.f32.mxu0 %v982_v0 }
  0x90   : > { %v320_v17 = vpop.permute.xlu0 %319  ;;  %v330_v27 = vpop.permute.xlu1 %329 }
  0x94   : > { %v325_v22 = vpop.permute.xlu0 %324  ;;  %v335_v42 = vpop.permute.xlu1 %334 }
  0x98   : > { %v481_v61 = vpop.permute.xlu0 %480  ;;  %v486_v3 = vpop.permute.xlu1 %485 }
  0x9c   : > { %v491_v10 = vpop.permute.xlu0 %490 }
  0xf2   : > { %v423_v18 = vpop.f32.mrb[0].mxu0 }
  0xf3   : > { %v424_v19 = vadd.f32 %v423_v18, %v320_v17  ;;  %v425_v20 = vpop.f32.mrb[1].mxu0 }
  0xf4   : > { %v426_v21 = vadd.f32 %v425_v20, %v320_v17 }
  0xf5   : > { %v454_v24 = vmul.f32 0.01, %v424_v19  ;;  %vm446_vm2 = vcmp.ge.f32.partialorder %v424_v19, 0.0 }
  0xf6   : > { %v429_v23 = vpop.f32.mrb[2].mxu0  ;;  %v455_v28 = vmul.f32 0.01, %v426_v21  ;;  %vm447_vm3 = vcmp.ge.f32.partialorder %v426_v21, 0.0 }
  0xf7   : > { %v430_v25 = vadd.f32 %v429_v23, %v325_v22  ;;  %v431_v26 = vpop.f32.mrb[3].mxu0  ;;  %v462_v35 = vsel %vm446_vm2, %v424_v19, %v454_v24 }
  0xf8   : > { %v432_v29 = vadd.f32 %v431_v26, %v325_v22  ;;  %v463_v38 = vsel %vm447_vm3, %v426_v21, %v455_v28  ;;  %v496_v22 = vpop.permute.xlu1 %495 }
  0xf9   : > { %v456_v30 = vmul.f32 0.01, %v430_v25  ;;  %vm448_vm4 = vcmp.ge.f32.partialorder %v430_v25, 0.0 }
  0xfa   : > { %v457_v31 = vmul.f32 0.01, %v432_v29  ;;  %v435_v32 = vpop.f32.mrb[4].mxu0  ;;  %vm449_vm5 = vcmp.ge.f32.partialorder %v432_v29, 0.0 }
  0xfb   : > { %v436_v33 = vadd.f32 %v435_v32, %v330_v27  ;;  %v437_v34 = vpop.f32.mrb[5].mxu0  ;;  %v464_v36 = vsel %vm448_vm4, %v430_v25, %v456_v30 }
  0xfc   : > { %v438_v37 = vadd.f32 %v437_v34, %v330_v27  ;;  %v465_v39 = vsel %vm449_vm5, %v432_v29, %v457_v31  ;;  %v828_v40 = vpack.c.bf16 %v464_v36, %v462_v35 }
  0xfd   : > { %v826_v41 = vpack.c.bf16 %v465_v39, %v463_v38  ;;  %v458_v44 = vmul.f32 0.01, %v436_v33  ;;  %vm450_vm6 = vcmp.ge.f32.partialorder %v436_v33, 0.0  ;;  %v629_v38 = vpop.permute.xlu0 %628 }
  0xfe   : > { %v441_v43 = vpop.f32.mrb[6].mxu0  ;;  %v459_v47 = vmul.f32 0.01, %v438_v37  ;;  %vm451_vm7 = vcmp.ge.f32.partialorder %v438_v37, 0.0 }
  0xff   : > { %v442_v45 = vadd.f32 %v441_v43, %v335_v42  ;;  %v443_v46 = vpop.f32.mrb[7].mxu0  ;;  %827 = vmatprep.subr.bf16.mxu1 %v826_v41  ;;  %v466_v51 = vsel %vm450_vm6, %v436_v33, %v458_v44 }
 0x100   : > { %v444_v48 = vadd.f32 %v443_v46, %v335_v42  ;;  %829 = vmatpush1.bf16.msra.mxu1 %v828_v40  ;;  %v467_v53 = vsel %vm451_vm7, %v438_v37, %v459_v47  ;;  %v624_v37 = vld [vmem:[%s1214_s5] sm:$0xff] }
 0x101   : > { %vm452_vm8 = vcmp.ge.f32.partialorder %v442_v45, 0.0  ;;  %v460_v49 = vmul.f32 0.01, %v442_v45 }
 0x102   : > { %vm453_vm9 = vcmp.ge.f32.partialorder %v444_v48, 0.0  ;;  %v461_v50 = vmul.f32 0.01, %v444_v48 }
 0x103   : > { %v468_v52 = vsel %vm452_vm8, %v442_v45, %v460_v49 }
 0x104   : > { %v469_v54 = vsel %vm453_vm9, %v444_v48, %v461_v50  ;;  %v832_v55 = vpack.c.bf16 %v468_v52, %v466_v51 }
 0x105   : > { %v830_v56 = vpack.c.bf16 %v469_v54, %v467_v53 }
 0x107   : > { %831 = vmatprep.subr.bf16.mxu1 %v830_v56 }
 0x108   : > { %833 = vmatpush1.bf16.msra.mxu1 %v832_v55 }
 0x10b   : > { %814 = vmatmul.mubr.msk.f32.vlgmr.msra.gmra.mrb[0].mxu1 %vm498_vm10, %v470_v57 }
 0x10c   : > { %581 = vmatprep.mubr.f32.mxu1 %v982_v0 }
 0x10f   : > { %815 = vmatmul.mubr.msk.f32.gmra.mrb[2].mxu1 %vm498_vm10, %v471_v58 }
 0x110   : > { %587 = vmatprep.mubr.f32.mxu1 %v982_v0 }
 0x113   : > { %816 = vmatmul.mubr.msk.f32.gmra.mrb[4].mxu1 %vm498_vm10, %v472_v59 }
 0x114   : > { %593 = vmatprep.mubr.f32.mxu1 %v982_v0 }
 0x117   : > { %817 = vmatmul.mubr.msk.f32.gmra.mrb[6].mxu1 %vm498_vm10, %v473_v60 }
 0x1de   : > { %v577_v62 = vpop.f32.mrb[0].mxu1 }
 0x1df   : > { %v578_v63 = vadd.f32 %v577_v62, %v481_v61  ;;  %v579_v1 = vpop.f32.mrb[1].mxu1 }
 0x1e0   : > { %v580_v2 = vadd.f32 %v579_v1, %v481_v61 }
 0x1e1   : > { %v608_v5 = vmul.f32 0.01, %v578_v63  ;;  %vm600_vm11 = vcmp.ge.f32.partialorder %v578_v63, 0.0 }
 0x1e2   : > { %v583_v4 = vpop.f32.mrb[2].mxu1  ;;  %v609_v8 = vmul.f32 0.01, %v580_v2  ;;  %vm601_vm12 = vcmp.ge.f32.partialorder %v580_v2, 0.0 }
 0x1e3   : > { %v584_v6 = vadd.f32 %v583_v4, %v486_v3  ;;  %v585_v7 = vpop.f32.mrb[3].mxu1  ;;  %v616_v13 = vsel %vm600_vm11, %v578_v63, %v608_v5 }
 0x1e4   : > { %v586_v9 = vadd.f32 %v585_v7, %v486_v3  ;;  %v617_v19 = vsel %vm601_vm12, %v580_v2, %v609_v8 }
 0x1e5   : > { %vm602_vm13 = vcmp.ge.f32.partialorder %v584_v6, 0.0  ;;  %v610_v0 = vmul.f32 0.01, %v584_v6 }
 0x1e6   : > { %vm603_vm14 = vcmp.ge.f32.partialorder %v586_v9, 0.0  ;;  %v611_v11 = vmul.f32 0.01, %v586_v9  ;;  %v589_v12 = vpop.f32.mrb[4].mxu1 }
 0x1e7   : > { %v618_v14 = vsel %vm602_vm13, %v584_v6, %v610_v0  ;;  %v590_v15 = vadd.f32 %v589_v12, %v491_v10  ;;  %v591_v16 = vpop.f32.mrb[5].mxu1 }
 0x1e8   : > { %v836_v17 = vpack.c.bf16 %v618_v14, %v616_v13  ;;  %v592_v18 = vadd.f32 %v591_v16, %v491_v10  ;;  %v619_v20 = vsel %vm603_vm14, %v586_v9, %v611_v11 }
 0x1e9   : > { %v834_v21 = vpack.c.bf16 %v619_v20, %v617_v19  ;;  %v612_v24 = vmul.f32 0.01, %v590_v15  ;;  %vm604_vm15 = vcmp.ge.f32.partialorder %v590_v15, 0.0 }
 0x1ea   : > { %v595_v23 = vpop.f32.mrb[6].mxu1  ;;  %v613_v27 = vmul.f32 0.01, %v592_v18  ;;  %vm605_vm0 = vcmp.ge.f32.partialorder %v592_v18, 0.0 }
 0x1eb   : > { %v596_v25 = vadd.f32 %v595_v23, %v496_v22  ;;  %v597_v26 = vpop.f32.mrb[7].mxu1  ;;  %835 = vmatprep.subr.bf16.mxu0 %v834_v21  ;;  %v620_v31 = vsel %vm604_vm15, %v590_v15, %v612_v24 }
 0x1ec   : > { %v598_v28 = vadd.f32 %v597_v26, %v496_v22  ;;  %837 = vmatpush1.bf16.msra.mxu0 %v836_v17  ;;  %v621_v34 = vsel %vm605_vm0, %v592_v18, %v613_v27 }
 0x1ed   : > { %vm606_vm1 = vcmp.ge.f32.partialorder %v596_v25, 0.0  ;;  %v614_v29 = vmul.f32 0.01, %v596_v25 }
 0x1ee   : > { %vm607_vm2 = vcmp.ge.f32.partialorder %v598_v28, 0.0  ;;  %v615_v30 = vmul.f32 0.01, %v598_v28 }
 0x1ef   : > { %v622_v32 = vsel %vm606_vm1, %v596_v25, %v614_v29 }
 0x1f0   : > { %v840_v33 = vpack.c.bf16 %v622_v32, %v620_v31  ;;  %v623_v35 = vsel %vm607_vm2, %v598_v28, %v615_v30 }
 0x1f1   : > { %v838_v36 = vpack.c.bf16 %v623_v35, %v621_v34 }
 0x1f3   : > { %839 = vmatprep.subr.bf16.mxu0 %v838_v36 }
 0x1f4   : > { %841 = vmatpush1.bf16.msra.mxu0 %v840_v33 }
 0x1f7   : > { %818 = vmatmul.mubr.msk.f32.vlgmr.msra.gmra.mrb[8].mxu0 %vm498_vm10, %v624_v37 }
 0x2ca   : > { %v700_v39 = vpop.f32.mrb[8].mxu0 }
 0x2cb   : > { %v701_v40 = vadd.f32 %v700_v39, %v629_v38  ;;  %v702_v41 = vpop.f32.mrb[9].mxu0 }
 0x2cc   : > { %v703_v42 = vadd.f32 %v702_v41, %v629_v38 }
 0x2cd   : > { %705 = vst [vmem:[%s296_s21] sm:$0xff] %v701_v40 }
 0x2ce   : > { %706 = vst [vmem:[%s296_s21 + $0x8] sm:$0xff] %v703_v42 }
 0x2cf   : > { %915 = shalt.err (!%p912_p5)
}
 0x2d0   : > { %s916_s16 = scalar_lea.hbm %s1162_s30, 256  ;;  %s920_s19 = scalar_lea.hbm %s1216_s7, 512 }
 0x2d1   : > { %p917_p6 = scmp.ne.s32.totalorder %s1162_s30, %s916_s16  ;;  %p921_p10 = scmp.lt.u32.totalorder %s1162_s30, %s1216_s7 }
 0x2d2   : > { %p922_p11 = scmp.lt.u32.totalorder %s920_s19, %s916_s16  ;;  %p924_p13 = scmp.lt.u32.totalorder %s916_s16, %s1162_s30 }
 0x2d3   : > { %p918_p7 = pnand %p917_p6, %p1065_p4 }
 0x2d4   : > { %p923_p12 = por %p922_p11, %p921_p10 }
 0x2d5   : > { %p919_p9 = pneg %p918_p7 }
 0x2d6   : > { %p925_p0 = por %p924_p13, %p923_p12 }
 0x2d8   : > { %p926_p1 = pnand %p925_p0, %p919_p9 }
 0x2da   : > { %929 = shalt.err (!%p926_p1)
}
 0x2db   : > { %842 = dma.vmem_to_hbm [thread:$0]  (%p1065_p4), %s1164_s20, 256, %s1162_s30, %s708_s27  }
 0x2dc PF: > { %p848_p2 = scmp.ge.s32.totalorder %s980_s29, 2  ;;  %s736_s23 = sand.u32 1, %s960_s24  }
 0x2dd   : > { %s737_s8 = scalar_lea.sflag [#allocation3], %s736_s23 }
 0x2de   : > { %p845_p3 = pnand %p848_p2, %p1072_p8 }
 0x2e0   : > { %955 = dma.done.wait (!%p845_p3), %s737_s8, 256  }
 0x2e1   : > { %957 = vsyncadd (!%p845_p3), %s737_s8, 4294967040  ;;  %s20_s29 = sadd.s32 1, %s980_s29   ;;  %s1219_s24 = smov %s964_s25 }
 0x2e2   : > { %p17_p5 = scmp.ge.s32.totalorder %s20_s29, 4   ;;  %s1220_s25 = smov %s968_s26 }
 0x2e3   : > { %s1221_s26 = smov %s1078_s14  ;;  %s1222_s27 = smov %s976_s28 }
 0x2e4   : > { %s1223_s28 = smov %s1225_s9  ;;  %19 = sbr.rel (!%p17_p5) target bundleno = 4 (0x4), region = 83 }
 0x2eb   :  { %742 = vsyncpa [#allocation3], 1 }
 0x2ec   :  { %744 = vsyncpa [#allocation3 + $0x1], 1 }

</bundles_post_ra>
